<compile_context>
chip_gen: v7x
topology: tpu7x:2x2x1
jax: 0.10.0
libtpu: 0.0.40
codegen_flags: <defaults>
</compile_context>

<pallas_src>
import functools

import jax
import jax.numpy as jnp
from jax import lax
from jax.experimental import pallas as pl
from jax.experimental.pallas import tpu as pltpu


def _round_up(x: int, m: int) -> int:
  return ((x + m - 1) // m) * m


def _matmul_kernel(a_ref, w_ref, o_ref, acc_ref):
  """Computes o = a @ w.T with f32 accumulation.

  a_ref: (tm, tk)   activation tile
  w_ref: (tn, tk)   weight tile in PyTorch (out, in) layout
  o_ref: (tm, tn)
  acc_ref: (tm, tn) f32 accumulator, persists across the K grid axis.
  """
  @pl.when(pl.program_id(2) == 0)
  def _():
    acc_ref[...] = jnp.zeros_like(acc_ref)

  # Contract A's K (axis 1) with W's K (axis 1): trans_b matmul, MXU-native.
  acc_ref[...] += lax.dot_general(
      a_ref[...],
      w_ref[...],
      dimension_numbers=(((1,), (1,)), ((), ())),
      preferred_element_type=jnp.float32,
  )

  @pl.when(pl.program_id(2) == pl.num_programs(2) - 1)
  def _():
    o_ref[...] = acc_ref[...].astype(o_ref.dtype)


def _projection_matmul(a, w, *, tm=256, tn=256, tk=1024,
                       vmem_limit_bytes=32 * 1024 * 1024):
  """a: (M, K), w: (N, K) -> (M, N) = a @ w.T via a tiled Pallas matmul.

  Tile sizes are capped to the (padded) problem dims; inputs are zero-padded so
  arbitrary M/N/K work without shrinking the tiles to degenerate sizes.
  """
  M, K = a.shape
  N, K2 = w.shape
  assert K == K2, f"contraction mismatch: {K} vs {K2}"

  # Clamp tiles to the problem size while respecting TPU (8, 128) tiling:
  #   sublane dims (tm, tn) -> multiples of 8; lane dims (tk, tn-as-output-lane) -> 128.
  tm = max(8, min(tm, _round_up(M, 8)))
  tn = max(128, min(tn, _round_up(N, 128)))
  tk = max(128, min(tk, _round_up(K, 128)))

  Mp, Np, Kp = _round_up(M, tm), _round_up(N, tn), _round_up(K, tk)
  if (Mp, Kp) != (M, K):
    a = jnp.pad(a, ((0, Mp - M), (0, Kp - K)))
  if (Np, Kp) != (N, K):
    w = jnp.pad(w, ((0, Np - N), (0, Kp - K)))

  grid = (Mp // tm, Np // tn, Kp // tk)

  itemsize = jnp.dtype(a.dtype).itemsize
  cost = pl.CostEstimate(
      flops=2 * Mp * Kp * Np,
      transcendentals=0,
      bytes_accessed=itemsize * (Mp * Kp + Np * Kp + Mp * Np),
  )

  out = pl.pallas_call(
      _matmul_kernel,
      out_shape=jax.ShapeDtypeStruct((Mp, Np), a.dtype),
      grid_spec=pltpu.PrefetchScalarGridSpec(
          num_scalar_prefetch=0,
          grid=grid,
          in_specs=[
              pl.BlockSpec((tm, tk), lambda i, j, k: (i, k)),
              pl.BlockSpec((tn, tk), lambda i, j, k: (j, k)),
          ],
          out_specs=pl.BlockSpec((tm, tn), lambda i, j, k: (i, j)),
          scratch_shapes=[pltpu.VMEM((tm, tn), jnp.float32)],
      ),
      compiler_params=pltpu.CompilerParams(
          dimension_semantics=("parallel", "parallel", "arbitrary"),
          vmem_limit_bytes=vmem_limit_bytes,
      ),
      cost_estimate=cost,
  )(a, w)

  if (Mp, Np) != (M, N):
    out = out[:M, :N]
  return out


def pixel_shuffle(x, scale_factor):
  """Exact port of SmolVLMConnector.pixel_shuffle. x: (B, seq, D)."""
  bsz, seq, embed_dim = x.shape
  height = width = int(seq ** 0.5)
  if height * width != seq:
    raise ValueError(f"Invalid sequence length: {seq}. Must be a perfect square.")
  s = scale_factor
  x = x.reshape(bsz, height, width, embed_dim)
  x = x.reshape(bsz, height, width // s, embed_dim * s)
  x = jnp.transpose(x, (0, 2, 1, 3))                      # (b, w/s, h, d*s)
  x = x.reshape(bsz, width // s, height // s, embed_dim * s * s)
  x = jnp.transpose(x, (0, 2, 1, 3))                      # (b, h/s, w/s, d*s^2)
  x = x.reshape(bsz, seq // (s * s), embed_dim * s * s)
  return x


@functools.partial(jax.jit, static_argnames=("scale_factor",))
def smolvlm_connector(x, weight, scale_factor):
  """Forward pass of SmolVLMConnector.

  x:      (B, seq, vision_hidden)
  weight: (text_hidden, vision_hidden * scale_factor**2)  -- PyTorch Linear layout
  returns (B, seq / scale_factor**2, text_hidden)
  """
  xs = pixel_shuffle(x, scale_factor)                     # (B, S', K)
  B, Sp, K = xs.shape
  N = weight.shape[0]
  a = xs.reshape(B * Sp, K)
  # Weight stays in (N, K) layout; the kernel contracts against its last dim.
  out = _projection_matmul(a, weight)
  return out.reshape(B, Sp, N)


if __name__ == "__main__":
  # Small config consistent with the module's constraints.
  scale_factor = 2
  vision_hidden_size = 64
  text_hidden_size = 128
  batch = 2
  seq = 64          # perfect square (8x8 grid of patches)

  input_size = vision_hidden_size * scale_factor ** 2     # 256

  key = jax.random.PRNGKey(0)
  kx, kw = jax.random.split(key)
  x = jax.random.normal(kx, (batch, seq, vision_hidden_size), dtype=jnp.float32)
  # nn.Linear(input_size, text_hidden_size, bias=False).weight shape:
  weight = (jax.random.normal(kw, (text_hidden_size, input_size), dtype=jnp.float32)
            * (1.0 / input_size ** 0.5))

  out = smolvlm_connector(x, weight, scale_factor)
  out = jax.block_until_ready(out)

  # Pure-JAX reference check (same math, no Pallas).
  ref = pixel_shuffle(x, scale_factor) @ weight.T
  assert out.shape == (batch, seq // scale_factor ** 2, text_hidden_size)
  assert jnp.allclose(out, ref, atol=1e-3, rtol=1e-3), (
      float(jnp.max(jnp.abs(out - ref))))

  print("KERNEL_OK")
</pallas_src>

<mosaic_0001>
module attributes {stable_mosaic.version = 11 : i64} {
  func.func @_matmul_kernel(%arg0: i32, %arg1: i32, %arg2: i32, %arg3: memref<32x256xf32, #tpu.memory_space<vmem>>, %arg4: memref<128x256xf32, #tpu.memory_space<vmem>>, %arg5: memref<32x128xf32, #tpu.memory_space<vmem>>, %arg6: memref<32x128xf32, #tpu.memory_space<vmem>>) attributes {dimension_semantics = [#tpu.dimension_semantics<parallel>, #tpu.dimension_semantics<parallel>, #tpu.dimension_semantics<arbitrary>], iteration_bounds = array<i64: 1, 1, 1>, scalar_prefetch = 0 : i64, scratch_operands = 1 : i64, tpu.core_type = #tpu.core_type<tc>, window_params = [{transform_indices = @transform_0, window_bounds = array<i64: 32, 256>}, {transform_indices = @transform_1, window_bounds = array<i64: 128, 256>}, {transform_indices = @transform_2, window_bounds = array<i64: 32, 128>}]} {
    %c0_i32 = arith.constant 0 : i32
    %0 = arith.cmpi eq, %arg2, %c0_i32 : i32
    %1 = arith.extui %0 : i1 to i32
    %c0_i32_0 = arith.constant 0 : i32
    %2 = arith.cmpi ne, %1, %c0_i32_0 : i32
    scf.if %2 {
      %cst_10 = arith.constant 0.000000e+00 : f32
      %12 = vector.broadcast %cst_10 : f32 to vector<32x128xf32>
      %c0_11 = arith.constant 0 : index
      %c0_12 = arith.constant 0 : index
      %13 = vector.load %arg6[%c0_11, %c0_12] : memref<32x128xf32, #tpu.memory_space<vmem>>, vector<32x128xf32>
      tpu.vector_store %arg6[%c0_11, %c0_12], %12 {strides = array<i32>} : memref<32x128xf32, #tpu.memory_space<vmem>>, vector<32x128xf32>,
    } else {
    }
    %c0 = arith.constant 0 : index
    %c0_1 = arith.constant 0 : index
    %3 = vector.load %arg6[%c0, %c0_1] : memref<32x128xf32, #tpu.memory_space<vmem>>, vector<32x128xf32>
    %c0_2 = arith.constant 0 : index
    %c0_3 = arith.constant 0 : index
    %4 = vector.load %arg3[%c0_2, %c0_3] : memref<32x256xf32, #tpu.memory_space<vmem>>, vector<32x256xf32>
    %c0_4 = arith.constant 0 : index
    %c0_5 = arith.constant 0 : index
    %5 = vector.load %arg4[%c0_4, %c0_5] : memref<128x256xf32, #tpu.memory_space<vmem>>, vector<128x256xf32>
    %cst = arith.constant dense<0.000000e+00> : vector<32x128xf32>
    %6 = tpu.matmul %4, %5, %cst {dimension_numbers = #tpu.dot_dimension_numbers<[1], [1], [0], [0], [0, 0, 1, 0], [], []>} : vector<32x256xf32>, vector<128x256xf32>, vector<32x128xf32> -> vector<32x128xf32>
    %7 = arith.addf %3, %6 : vector<32x128xf32>
    %c0_6 = arith.constant 0 : index
    %c0_7 = arith.constant 0 : index
    %8 = vector.load %arg6[%c0_6, %c0_7] : memref<32x128xf32, #tpu.memory_space<vmem>>, vector<32x128xf32>
    tpu.vector_store %arg6[%c0_6, %c0_7], %7 {strides = array<i32>} : memref<32x128xf32, #tpu.memory_space<vmem>>, vector<32x128xf32>,
    %c0_i32_8 = arith.constant 0 : i32
    %9 = arith.cmpi eq, %arg2, %c0_i32_8 : i32
    %10 = arith.extui %9 : i1 to i32
    %c0_i32_9 = arith.constant 0 : i32
    %11 = arith.cmpi ne, %10, %c0_i32_9 : i32
    scf.if %11 {
      %c0_10 = arith.constant 0 : index
      %c0_11 = arith.constant 0 : index
      %12 = vector.load %arg6[%c0_10, %c0_11] : memref<32x128xf32, #tpu.memory_space<vmem>>, vector<32x128xf32>
      %c0_12 = arith.constant 0 : index
      %c0_13 = arith.constant 0 : index
      %13 = vector.load %arg5[%c0_12, %c0_13] : memref<32x128xf32, #tpu.memory_space<vmem>>, vector<32x128xf32>
      tpu.vector_store %arg5[%c0_12, %c0_13], %12 {strides = array<i32>} : memref<32x128xf32, #tpu.memory_space<vmem>>, vector<32x128xf32>,
    } else {
    }
    return
  }
  func.func @transform_0(%arg0: i32, %arg1: i32, %arg2: i32) -> (i32, i32) {
    %c0_i32 = arith.constant 0 : i32
    return %arg0, %arg2 : i32, i32
  }
  func.func @transform_1(%arg0: i32, %arg1: i32, %arg2: i32) -> (i32, i32) {
    %c0_i32 = arith.constant 0 : i32
    return %arg1, %arg2 : i32, i32
  }
  func.func @transform_2(%arg0: i32, %arg1: i32, %arg2: i32) -> (i32, i32) {
    %c0_i32 = arith.constant 0 : i32
    return %arg0, %arg1 : i32, i32
  }
}

</mosaic_0001>

<bundles_post_ra>
// kernel: smolvlm_connector.1
= control target key start
LH: loop header
LB: loop body
LE: loop exit
PB: predicated region body
PF: predicated region fallthrough
CT: control target
= control target key end

     0   :  { %s409_s0 = inlined_call_operand.vmem [shape: f32[32,256], index: 0, kind: input, shape index: {}]   ;;  %s410_s1 = inlined_call_operand.vmem [shape: f32[128,256], index: 1, kind: input, shape index: {}]   ;;  %s411_s2 = inlined_call_operand.hbm [shape: f32[32,128], index: 2, kind: output, shape index: {}]  }
   0x1   :  { %v33_v0 = vld [vmem:[%s410_s1 + $0x8] sm:$0xff]  ;;  %v35_v1 = vld [vmem:[%s410_s1 + $0x18] sm:$0xff]  ;;  %v32_v2 = vld [vmem:[%s410_s1] sm:$0xff] }
   0x2   :  { %v184_v3 = vpack.c.bf16 %v35_v1, %v33_v0  ;;  %v34_v4 = vld [vmem:[%s410_s1 + $0x10] sm:$0xff]  ;;  %v37_v5 = vld [vmem:[%s410_s1 + $0x28] sm:$0xff]  ;;  %v39_v6 = vld [vmem:[%s410_s1 + $0x38] sm:$0xff] }
   0x3   :  { %v186_v7 = vpack.c.bf16 %v34_v4, %v32_v2  ;;  %v188_v8 = vpack.c.bf16 %v39_v6, %v37_v5  ;;  %v36_v9 = vld [vmem:[%s410_s1 + $0x20] sm:$0xff]  ;;  %v38_v10 = vld [vmem:[%s410_s1 + $0x30] sm:$0xff]  ;;  %v41_v11 = vld [vmem:[%s410_s1 + $0x48] sm:$0xff] }
   0x4   :  { %185 = vmatprep.subr.bf16.mxu0 %v184_v3  ;;  %216 = vmatprep.subr.bf16.mxu1 %v184_v3  ;;  %v43_v12 = vld [vmem:[%s410_s1 + $0x58] sm:$0xff]  ;;  %v190_v13 = vpack.c.bf16 %v38_v10, %v36_v9  ;;  %v25_v15 = vld [vmem:[%s409_s0 + $0x8] sm:$0xff]  ;;  %v40_v17 = vld [vmem:[%s410_s1 + $0x40] sm:$0xff] }
   0x5   :  { %187 = vmatpush1.bf16.xpose.msra.mxu0 %v186_v7  ;;  %224 = vmatpush1.bf16.xpose.msra.mxu1 %v186_v7  ;;  %v192_v14 = vpack.c.bf16 %v43_v12, %v41_v11  ;;  %v29_v16 = vld [vmem:[%s409_s0 + $0x28] sm:$0xff]  ;;  %v42_v18 = vld [vmem:[%s410_s1 + $0x50] sm:$0xff] }
   0x6   :  { %189 = vmatprep.subr.bf16.mxu0 %v188_v8  ;;  %217 = vmatprep.subr.bf16.mxu1 %v188_v8 }
   0x7   :  { %128 = vmatprep.mubr.f32.mxu0 %v25_v15 }
   0xd   :  { %191 = vmatpush1.bf16.xpose.msra.mxu0 %v190_v13  ;;  %225 = vmatpush1.bf16.xpose.msra.mxu1 %v190_v13 }
   0xe   :  { %193 = vmatprep.subr.bf16.mxu0 %v192_v14  ;;  %218 = vmatprep.subr.bf16.mxu1 %v192_v14 }
   0xf   :  { %7 = vsyncpa [#allocation4], 0  ;;  %v45_v19 = vld [vmem:[%s410_s1 + $0x68] sm:$0xff]  ;;  %v47_v20 = vld [vmem:[%s410_s1 + $0x78] sm:$0xff]  ;;  %138 = vmatprep.mubr.f32.mxu1 %v29_v16  ;;  %v194_v21 = vpack.c.bf16 %v42_v18, %v40_v17  ;;  %s259_s4 = smov [#allocation3]  }
  0x10   :  { %v196_v22 = vpack.c.bf16 %v47_v20, %v45_v19  ;;  %v44_v23 = vld [vmem:[%s410_s1 + $0x60] sm:$0xff]  ;;  %v46_v24 = vld [vmem:[%s410_s1 + $0x70] sm:$0xff]  ;;  %v49_v25 = vld [vmem:[%s410_s1 + $0x88] sm:$0xff]  ;;  %s173_s5 = sshll.u32 %s259_s4, 4  ;;  %s174_s5 = int_to_ptr.vmem [resolvable:$true] %s173_s5 }
  0x11   :  { %v51_v26 = vld [vmem:[%s410_s1 + $0x98] sm:$0xff]  ;;  %v198_v27 = vpack.c.bf16 %v46_v24, %v44_v23  ;;  %v48_v29 = vld [vmem:[%s410_s1 + $0x80] sm:$0xff]  ;;  %v50_v30 = vld [vmem:[%s410_s1 + $0x90] sm:$0xff]  ;;  %s235_s6 = scalar_lea.vmem %s174_s5, 512  ;;  %p240_p1 = scmp.lt.s32.totalorder %s174_s5, %s174_s5 }
  0x12   :  { %v200_v28 = vpack.c.bf16 %v51_v26, %v49_v25  ;;  %v53_v31 = vld [vmem:[%s410_s1 + $0xa8] sm:$0xff]  ;;  %v55_v32 = vld [vmem:[%s410_s1 + $0xb8] sm:$0xff]  ;;  %v202_v33 = vpack.c.bf16 %v50_v30, %v48_v29  ;;  %v52_v35 = vld [vmem:[%s410_s1 + $0xa0] sm:$0xff]  ;;  %p236_p0 = scmp.ne.s32.totalorder %s174_s5, %s235_s6  ;;  %p241_p2 = scmp.lt.s32.totalorder %s235_s6, %s235_s6 }
  0x13   :  { %v204_v34 = vpack.c.bf16 %v55_v32, %v53_v31  ;;  %v54_v36 = vld [vmem:[%s410_s1 + $0xb0] sm:$0xff]  ;;  %v57_v37 = vld [vmem:[%s410_s1 + $0xc8] sm:$0xff]  ;;  %v59_v38 = vld [vmem:[%s410_s1 + $0xd8] sm:$0xff] }
  0x14   :  { %v206_v39 = vpack.c.bf16 %v54_v36, %v52_v35  ;;  %v208_v40 = vpack.c.bf16 %v59_v38, %v57_v37  ;;  %v56_v41 = vld [vmem:[%s410_s1 + $0xc0] sm:$0xff]  ;;  %v58_v42 = vld [vmem:[%s410_s1 + $0xd0] sm:$0xff]  ;;  %v61_v43 = vld [vmem:[%s410_s1 + $0xe8] sm:$0xff]  ;;  %p242_p3 = por %p241_p2, %p240_p1 }
  0x15   :  { %195 = vmatpush1.bf16.xpose.msra.mxu0 %v194_v21  ;;  %226 = vmatpush1.bf16.xpose.msra.mxu1 %v194_v21  ;;  %v63_v44 = vld [vmem:[%s410_s1 + $0xf8] sm:$0xff]  ;;  %v210_v45 = vpack.c.bf16 %v58_v42, %v56_v41  ;;  %v60_v47 = vld [vmem:[%s410_s1 + $0xe0] sm:$0xff]  ;;  %v62_v48 = vld [vmem:[%s410_s1 + $0xf0] sm:$0xff] }
  0x16   :  { %197 = vmatprep.subr.bf16.mxu0 %v196_v22  ;;  %219 = vmatprep.subr.bf16.mxu1 %v196_v22  ;;  %v212_v46 = vpack.c.bf16 %v63_v44, %v61_v43  ;;  %v214_v49 = vpack.c.bf16 %v62_v48, %v60_v47  ;;  %v24_v50 = vld [vmem:[%s409_s0] sm:$0xff]  ;;  %v27_v52 = vld [vmem:[%s409_s0 + $0x18] sm:$0xff]  ;;  %v26_v54 = vld [vmem:[%s409_s0 + $0x10] sm:$0xff]  ;;  %p243_p4 = pnand %p242_p3, %p236_p0 }
  0x17   :  { %v28_v51 = vld [vmem:[%s409_s0 + $0x20] sm:$0xff]  ;;  %v31_v53 = vld [vmem:[%s409_s0 + $0x38] sm:$0xff]  ;;  %v30_v55 = vld [vmem:[%s409_s0 + $0x30] sm:$0xff] }
  0x1d   :  { %199 = vmatpush1.bf16.xpose.msra.mxu0 %v198_v27  ;;  %227 = vmatpush1.bf16.xpose.msra.mxu1 %v198_v27 }
  0x1e   :  { %201 = vmatprep.subr.bf16.mxu0 %v200_v28  ;;  %220 = vmatprep.subr.bf16.mxu1 %v200_v28 }
  0x25   :  { %203 = vmatpush1.bf16.xpose.msra.mxu0 %v202_v33  ;;  %228 = vmatpush1.bf16.xpose.msra.mxu1 %v202_v33 }
  0x26   :  { %205 = vmatprep.subr.bf16.mxu0 %v204_v34  ;;  %221 = vmatprep.subr.bf16.mxu1 %v204_v34 }
  0x2d   :  { %207 = vmatpush1.bf16.xpose.msra.mxu0 %v206_v39  ;;  %229 = vmatpush1.bf16.xpose.msra.mxu1 %v206_v39 }
  0x2e   :  { %209 = vmatprep.subr.bf16.mxu0 %v208_v40  ;;  %222 = vmatprep.subr.bf16.mxu1 %v208_v40 }
  0x35   :  { %211 = vmatpush1.bf16.xpose.msra.mxu0 %v210_v45  ;;  %230 = vmatpush1.bf16.xpose.msra.mxu1 %v210_v45 }
  0x36   :  { %213 = vmatprep.subr.bf16.mxu0 %v212_v46  ;;  %223 = vmatprep.subr.bf16.mxu1 %v212_v46 }
  0x3d   :  { %215 = vmatpush1.bf16.xpose.msra.mxu0 %v214_v49  ;;  %231 = vmatpush1.bf16.xpose.msra.mxu1 %v214_v49 }
  0x44   :  { %129 = vmatmul.mubr.f32.vlgmr.msra.gmra.mrb[0].mxu0 %v24_v50  ;;  %139 = vmatmul.mubr.f32.vlgmr.msra.gmra.mrb[0].mxu1 %v28_v51 }
  0x45   :  { %133 = vmatprep.mubr.f32.mxu0 %v27_v52  ;;  %143 = vmatprep.mubr.f32.mxu1 %v31_v53 }
  0x48   :  { %134 = vmatmul.mubr.f32.gmra.mrb[2].mxu0 %v26_v54  ;;  %144 = vmatmul.mubr.f32.gmra.mrb[2].mxu1 %v30_v55 }
 0x117   :  { %v130_v56 = vpop.f32.mrb[0].mxu0  ;;  %v140_v57 = vpop.f32.mrb[0].mxu1 }
 0x118   :  { %164 = vst [vmem:[#allocation3] sm:$0xff] %v130_v56  ;;  %166 = vst [vmem:[#allocation3 + $0x10] sm:$0xff] %v140_v57  ;;  %v132_v58 = vpop.f32.mrb[1].mxu0  ;;  %v142_v59 = vpop.f32.mrb[1].mxu1 }
 0x11b   :  { %v135_v60 = vpop.f32.mrb[2].mxu0  ;;  %v145_v61 = vpop.f32.mrb[2].mxu1 }
 0x11c   :  { %165 = vst [vmem:[#allocation3 + $0x8] sm:$0xff] %v135_v60  ;;  %167 = vst [vmem:[#allocation3 + $0x18] sm:$0xff] %v145_v61  ;;  %v137_v62 = vpop.f32.mrb[3].mxu0  ;;  %v147_v63 = vpop.f32.mrb[3].mxu1 }
 0x11d   :  { %246 = shalt.err (!%p243_p4)
}
 0x11e   :  { %s247_s8 = scalar_lea.hbm %s411_s2, 512 }
 0x11f   :  { %p248_p5 = scmp.ne.s32.totalorder %s411_s2, %s247_s8  ;;  %p251_p6 = scmp.lt.u32.totalorder %s247_s8, %s411_s2 }
 0x121   :  { %p253_p7 = pnand %p251_p6, %p248_p5 }
 0x123   :  { %256 = shalt.err (!%p253_p7)
}
 0x124   :  { %s260_s13 = smov 128   ;;  %s261_s14 = smov 8  }
 0x125   :  { %179 = dma.vmem_to_hbm [thread:$0]  %s174_s5, 512, %s411_s2, [#allocation4], %s260_s13, %s260_s13, %s261_s14  }
 0x126   :  { %257 = dma.done.wait [#allocation4], 512  }
 0x127   :  { %258 = vsyncadd [#allocation4], 4294966784 }
 0x128   :  { %183 = vsyncpa [#allocation4], 1 }

</bundles_post_ra>
